<compile_context>
chip_gen: v7x
topology: tpu7x:2x2x1
jax: 0.10.0
libtpu: 0.0.40
codegen_flags: <defaults>
</compile_context>

<pallas_src>
import functools

import jax
import jax.numpy as jnp
from jax import lax
from jax.experimental import pallas as pl
from jax.experimental.pallas import tpu as pltpu

KH = KW = 11
_MXU_K = 256          # v6e/v7x MXU contraction depth (2x128 passes on v5e)


def _round_up(x, m):
    return (x + m - 1) // m * m


def _make_kernel(groups, rg, pitch, lz, tl):
    """Conv(11x11, stride folded via phases) + BN affine + ReLU for one tile.

    `groups` is a static list of (phase r, row-group g); one MXU dot per entry.
    """

    def kernel(z_ref, w_ref, scale_ref, shift_ref, o_ref, acc_ref):
        # z_ref:     (1, s*Lz, K_p)      phase-split, (RG*KW*Cin)-unfolded image
        #                                (VMEM-resident per image across tiles)
        # w_ref:     (NG, K_p, Cout_p)   per-group packed weights (resident)
        # scale_ref: (1, Cout_p) f32     folded BN scale
        # shift_ref: (1, Cout_p) f32     folded BN shift (includes conv bias)
        # o_ref:     (1, TL, Cout_p)
        # acc_ref:   (TL, Cout_p) f32 scratch accumulator
        base = pl.multiple_of(pl.program_id(1) * tl, 8)
        acc_ref[...] = jnp.zeros_like(acc_ref)
        # Short static loop (~ceil(KH/RG) iterations); accumulate directly into
        # the VMEM accumulator so live ranges stay bounded.
        for gi, (r, g) in enumerate(groups):
            row0 = pl.multiple_of(base + r * lz + g * rg * pitch, 8)
            lhs = z_ref[0, pl.ds(row0, tl), :]           # (TL, K_p) lane-dense
            acc_ref[...] += jnp.dot(lhs, w_ref[gi],
                                    preferred_element_type=jnp.float32)
        y = acc_ref[...] * scale_ref[...] + shift_ref[...]
        o_ref[0, :, :] = jnp.maximum(y, 0.0).astype(o_ref.dtype)

    return kernel


@functools.partial(
    jax.jit,
    static_argnames=("stride", "padding", "eps", "use_bn", "tl", "compute_dtype"))
def basic_conv2d_11x11(x_nchw, weight, bias, gamma, beta,
                       running_mean, running_var, *,
                       stride=1, padding=0, eps=1e-5, use_bn=True,
                       tl=512, compute_dtype=jnp.bfloat16):
    N, Cin, H, W = x_nchw.shape
    Cout = weight.shape[0]
    assert weight.shape == (Cout, Cin, KH, KW)
    s = int(stride)

    Hp, Wp = H + 2 * padding, W + 2 * padding
    OH = (Hp - KH) // s + 1
    OW = (Wp - KW) // s + 1
    assert OH > 0 and OW > 0

    # ---- packed-contraction geometry ---------------------------------------
    K_row = KW * Cin                                   # one kernel-row of contraction
    t_max = pl.cdiv(KH, s)                             # max taps in any stride phase
    RG = max(1, min(t_max, _MXU_K // max(1, K_row)))   # kernel rows packed per dot
    K_raw = RG * K_row
    K_p = _round_up(K_raw, 128)                        # lane-dense contraction
    Cout_p = _round_up(Cout, 128)                      # lane-dense output channels

    P = _round_up(OW, 8)                               # flattened row pitch (8-aligned)
    L_out = OH * P
    TL = _round_up(min(tl, L_out), 8)                  # spatial tile (matmul M)
    num_t = pl.cdiv(L_out, TL)
    L_pad = num_t * TL

    # Per-phase tap counts / row-groups (all static Python ints).
    T = [max(0, pl.cdiv(KH - r, s)) for r in range(s)]
    G = [pl.cdiv(T[r], RG) if T[r] > 0 else 0 for r in range(s)]
    groups = [(r, g) for r in range(s) for g in range(G[r])]
    NG = len(groups)
    g_max = max(G) - 1

    R_rows = pl.cdiv(L_pad, P) + g_max * RG            # phase rows the kernel reads
    Lz = R_rows * P                                    # per-phase flattened length
    R_ext = R_rows + RG - 1                            # rows the unfold itself needs
    H_ext = R_ext * s
    W_ext = (P - 1) * s + KW

    # ---- wrapper glue: unfold + phase split (no im2col over KH in HBM) -----
    xp = jnp.transpose(x_nchw, (0, 2, 3, 1))           # NHWC
    if padding > 0:
        xp = jnp.pad(xp, ((0, 0), (padding, padding), (padding, padding), (0, 0)))
    xpe = jnp.pad(xp, ((0, 0), (0, max(0, H_ext - Hp)),
                       (0, max(0, W_ext - Wp)), (0, 0)))
    xpe = xpe[:, :H_ext, :W_ext, :]
    # Unfold the 11 kernel columns (W-stride applied here).
    cols = [xpe[:, :, kw:kw + (P - 1) * s + 1:s, :] for kw in range(KW)]
    u = jnp.stack(cols, axis=3)                        # (N, H_ext, P, KW, Cin)
    # Split rows into stride phases: h = i*s + r.
    u = u.reshape(N, R_ext, s, P, KW, Cin).transpose(0, 2, 1, 3, 4, 5)
    # Pack RG consecutive phase-rows into the contraction dim.
    rows = [u[:, :, dq:dq + R_rows] for dq in range(RG)]
    z = jnp.stack(rows, axis=4)                        # (N, s, R_rows, P, RG, KW, Cin)
    z = z.reshape(N, s * Lz, K_raw)
    z = jnp.pad(z, ((0, 0), (0, 0), (0, K_p - K_raw))).astype(compute_dtype)

    # Weights: (Cout, Cin, KH, KW) -> (NG, K_p, Cout_p) matching the z layout.
    w_t = jnp.transpose(weight, (2, 3, 1, 0))          # (KH, KW, Cin, Cout)
    zero_row = jnp.zeros((KW, Cin, Cout), weight.dtype)
    wg_list = []
    for (r, g) in groups:
        slabs = []
        for dq in range(RG):
            kh = (g * RG + dq) * s + r
            slabs.append(w_t[kh] if kh < KH else zero_row)
        wg_list.append(jnp.stack(slabs, 0).reshape(K_raw, Cout))
    wk = jnp.stack(wg_list, 0)
    wk = jnp.pad(wk, ((0, 0), (0, K_p - K_raw),
                      (0, Cout_p - Cout))).astype(compute_dtype)

    # Fold conv bias + inference-mode BatchNorm into one per-channel affine.
    if use_bn:
        inv_std = lax.rsqrt(running_var.astype(jnp.float32) + eps)
        scale = gamma.astype(jnp.float32) * inv_std
        shift = beta.astype(jnp.float32) + \
            (bias.astype(jnp.float32) - running_mean.astype(jnp.float32)) * scale
    else:
        scale = jnp.ones((Cout,), jnp.float32)
        shift = bias.astype(jnp.float32)
    scale = jnp.pad(scale, (0, Cout_p - Cout)).reshape(1, Cout_p)
    shift = jnp.pad(shift, (0, Cout_p - Cout)).reshape(1, Cout_p)

    out_dtype = x_nchw.dtype
    cbytes = jnp.dtype(compute_dtype).itemsize
    obytes = jnp.dtype(out_dtype).itemsize

    # VMEM footprint (double-buffered blocks) -> limit capped at 48 MiB (v7x).
    vmem_need = (2 * s * Lz * K_p * cbytes
                 + 2 * NG * K_p * Cout_p * cbytes
                 + 2 * TL * Cout_p * obytes
                 + TL * Cout_p * 4
                 + 4 * Cout_p * 4)
    vmem_limit = int(min(48 * 1024 * 1024, max(16 * 1024 * 1024, 2 * vmem_need)))

    flops = 2 * N * num_t * NG * TL * K_p * Cout_p
    bytes_accessed = (z.size * cbytes + wk.size * cbytes
                      + (scale.size + shift.size) * 4
                      + N * L_pad * Cout_p * obytes)

    out_p = pl.pallas_call(
        _make_kernel(groups, RG, P, Lz, TL),
        out_shape=jax.ShapeDtypeStruct((N, L_pad, Cout_p), out_dtype),
        grid=(N, num_t),
        in_specs=[
            # Per-image unfolded block: constant index across t -> VMEM-resident.
            pl.BlockSpec((1, s * Lz, K_p), lambda n, t: (n, 0, 0)),
            pl.BlockSpec((NG, K_p, Cout_p), lambda n, t: (0, 0, 0)),
            pl.BlockSpec((1, Cout_p), lambda n, t: (0, 0)),
            pl.BlockSpec((1, Cout_p), lambda n, t: (0, 0)),
        ],
        out_specs=pl.BlockSpec((1, TL, Cout_p), lambda n, t: (n, t, 0)),
        scratch_shapes=[pltpu.VMEM((TL, Cout_p), jnp.float32)],
        compiler_params=pltpu.CompilerParams(
            dimension_semantics=("parallel", "parallel"),
            vmem_limit_bytes=vmem_limit),
        cost_estimate=pl.CostEstimate(
            flops=flops, transcendentals=0, bytes_accessed=bytes_accessed),
    )(z, wk, scale, shift)

    # Drop channel / column / tile padding, back to NCHW.
    out = out_p[:, :L_out, :Cout].reshape(N, OH, P, Cout)[:, :, :OW, :]
    return jnp.transpose(out, (0, 3, 1, 2))


def _reference(x, weight, bias, gamma, beta, mean, var, *,
               stride=1, padding=0, eps=1e-5, use_bn=True):
    Cout = weight.shape[0]
    y = lax.conv_general_dilated(
        x, weight, window_strides=(stride, stride),
        padding=((padding, padding), (padding, padding)),
        dimension_numbers=("NCHW", "OIHW", "NCHW"),
        precision=lax.Precision.HIGHEST)
    y = y + bias.reshape(1, Cout, 1, 1)
    if use_bn:
        y = (gamma.reshape(1, Cout, 1, 1)
             * (y - mean.reshape(1, Cout, 1, 1))
             / jnp.sqrt(var.reshape(1, Cout, 1, 1) + eps)
             + beta.reshape(1, Cout, 1, 1))
    return jnp.maximum(y, 0.0)


if __name__ == "__main__":
    key = jax.random.PRNGKey(0)
    k1, k2, k3, k4, k5, k6, k7 = jax.random.split(key, 7)

    # Small shapes consistent with the module: in_planes=4, out_planes=8,
    # 11x11 kernel; 16x16 input, stride=1, padding=0 -> 6x6 output.
    N, Cin, H, W = 2, 4, 16, 16
    Cout = 8

    x = jax.random.normal(k1, (N, Cin, H, W), jnp.float32)
    weight = jax.random.normal(k2, (Cout, Cin, 11, 11), jnp.float32) * 0.05
    bias = jax.random.normal(k3, (Cout,), jnp.float32) * 0.05
    gamma = jax.random.normal(k4, (Cout,), jnp.float32) * 0.1 + 1.0
    beta = jax.random.normal(k5, (Cout,), jnp.float32) * 0.1
    running_mean = jax.random.normal(k6, (Cout,), jnp.float32) * 0.1
    running_var = jax.random.uniform(k7, (Cout,), jnp.float32, minval=0.5, maxval=1.5)

    # 1) f32-operand run (module defaults): tight semantic check vs reference.
    y32 = basic_conv2d_11x11(x, weight, bias, gamma, beta, running_mean,
                             running_var, compute_dtype=jnp.float32)
    y32 = jax.block_until_ready(y32)
    ref32 = _reference(x, weight, bias, gamma, beta, running_mean, running_var)
    assert y32.shape == (N, Cout, 6, 6), y32.shape
    assert jnp.allclose(y32, ref32, atol=2e-3, rtol=2e-3), \
        float(jnp.max(jnp.abs(y32 - ref32)))

    # 2) bf16-operand run (MXU production config) vs bf16-rounded reference.
    y16 = basic_conv2d_11x11(x, weight, bias, gamma, beta,
                             running_mean, running_var)
    y16 = jax.block_until_ready(y16)
    xb = x.astype(jnp.bfloat16).astype(jnp.float32)
    wb = weight.astype(jnp.bfloat16).astype(jnp.float32)
    ref16 = _reference(xb, wb, bias, gamma, beta, running_mean, running_var)
    assert y16.shape == (N, Cout, 6, 6), y16.shape
    assert jnp.allclose(y16, ref16, atol=2e-3, rtol=2e-3), \
        float(jnp.max(jnp.abs(y16 - ref16)))

    # 3) strided + padded config: stride folded into the kernel via phases.
    ys = basic_conv2d_11x11(x, weight, bias, gamma, beta, running_mean,
                            running_var, stride=2, padding=2,
                            compute_dtype=jnp.float32)
    ys = jax.block_until_ready(ys)
    refs = _reference(x, weight, bias, gamma, beta, running_mean, running_var,
                      stride=2, padding=2)
    assert ys.shape == refs.shape == (N, Cout, 5, 5), (ys.shape, refs.shape)
    assert jnp.allclose(ys, refs, atol=2e-3, rtol=2e-3), \
        float(jnp.max(jnp.abs(ys - refs)))

    print("KERNEL_OK")
</pallas_src>

<mosaic_0001>
module attributes {stable_mosaic.version = 11 : i64} {
  func.func @kernel(%arg0: i32, %arg1: i32, %arg2: memref<1x128x256xf32, #tpu.memory_space<vmem>>, %arg3: memref<3x256x128xf32, #tpu.memory_space<vmem>>, %arg4: memref<1x128xf32, #tpu.memory_space<vmem>>, %arg5: memref<1x128xf32, #tpu.memory_space<vmem>>, %arg6: memref<1x48x128xf32, #tpu.memory_space<vmem>>, %arg7: memref<48x128xf32, #tpu.memory_space<vmem>>) attributes {dimension_semantics = [#tpu.dimension_semantics<parallel>, #tpu.dimension_semantics<parallel>], iteration_bounds = array<i64: 2, 1>, scalar_prefetch = 0 : i64, scratch_operands = 1 : i64, tpu.core_type = #tpu.core_type<tc>, window_params = [{transform_indices = @transform_0, window_bounds = array<i64: 1, 128, 256>}, {pipeline_mode = #tpu.pipeline_mode<synchronous>, transform_indices = @transform_1, window_bounds = array<i64: 3, 256, 128>}, {pipeline_mode = #tpu.pipeline_mode<synchronous>, transform_indices = @transform_2, window_bounds = array<i64: 1, 128>}, {pipeline_mode = #tpu.pipeline_mode<synchronous>, transform_indices = @transform_3, window_bounds = array<i64: 1, 128>}, {transform_indices = @transform_4, window_bounds = array<i64: 1, 48, 128>}]} {
    %c48_i32 = arith.constant 48 : i32
    %0 = arith.muli %arg1, %c48_i32 : i32
    %1 = tpu.assume_multiple %0, 8 : i32
    %cst = arith.constant 0.000000e+00 : f32
    %2 = vector.broadcast %cst : f32 to vector<48x128xf32>
    %c0 = arith.constant 0 : index
    %c0_0 = arith.constant 0 : index
    %3 = vector.load %arg7[%c0, %c0_0] : memref<48x128xf32, #tpu.memory_space<vmem>>, vector<48x128xf32>
    tpu.vector_store %arg7[%c0, %c0_0], %2 {strides = array<i32>} : memref<48x128xf32, #tpu.memory_space<vmem>>, vector<48x128xf32>,
    %c0_i32 = arith.constant 0 : i32
    %4 = arith.addi %1, %c0_i32 : i32
    %c0_i32_1 = arith.constant 0 : i32
    %5 = arith.addi %4, %c0_i32_1 : i32
    %6 = tpu.assume_multiple %5, 8 : i32
    %c0_2 = arith.constant 0 : index
    %7 = arith.index_cast %6 : i32 to index
    %c0_3 = arith.constant 0 : index
    %8 = vector.load %arg2[%c0_2, %7, %c0_3] : memref<1x128x256xf32, #tpu.memory_space<vmem>>, vector<1x48x256xf32>
    %9 = vector.shape_cast %8 : vector<1x48x256xf32> to vector<48x256xf32>
    %c0_4 = arith.constant 0 : index
    %c0_5 = arith.constant 0 : index
    %10 = vector.load %arg7[%c0_4, %c0_5] : memref<48x128xf32, #tpu.memory_space<vmem>>, vector<48x128xf32>
    %c0_6 = arith.constant 0 : index
    %c0_7 = arith.constant 0 : index
    %c0_8 = arith.constant 0 : index
    %11 = vector.load %arg3[%c0_6, %c0_7, %c0_8] : memref<3x256x128xf32, #tpu.memory_space<vmem>>, vector<1x256x128xf32>
    %12 = vector.shape_cast %11 : vector<1x256x128xf32> to vector<256x128xf32>
    %cst_9 = arith.constant dense<0.000000e+00> : vector<48x128xf32>
    %13 = tpu.matmul %9, %12, %cst_9 {dimension_numbers = #tpu.dot_dimension_numbers<[1], [0], [0], [1], [0, 0, 1, 1], [], []>} : vector<48x256xf32>, vector<256x128xf32>, vector<48x128xf32> -> vector<48x128xf32>
    %14 = arith.addf %10, %13 : vector<48x128xf32>
    %c0_10 = arith.constant 0 : index
    %c0_11 = arith.constant 0 : index
    %15 = vector.load %arg7[%c0_10, %c0_11] : memref<48x128xf32, #tpu.memory_space<vmem>>, vector<48x128xf32>
    tpu.vector_store %arg7[%c0_10, %c0_11], %14 {strides = array<i32>} : memref<48x128xf32, #tpu.memory_space<vmem>>, vector<48x128xf32>,
    %c0_i32_12 = arith.constant 0 : i32
    %16 = arith.addi %1, %c0_i32_12 : i32
    %c40_i32 = arith.constant 40 : i32
    %17 = arith.addi %16, %c40_i32 : i32
    %18 = tpu.assume_multiple %17, 8 : i32
    %c0_13 = arith.constant 0 : index
    %19 = arith.index_cast %18 : i32 to index
    %c0_14 = arith.constant 0 : index
    %20 = vector.load %arg2[%c0_13, %19, %c0_14] : memref<1x128x256xf32, #tpu.memory_space<vmem>>, vector<1x48x256xf32>
    %21 = vector.shape_cast %20 : vector<1x48x256xf32> to vector<48x256xf32>
    %c0_15 = arith.constant 0 : index
    %c0_16 = arith.constant 0 : index
    %22 = vector.load %arg7[%c0_15, %c0_16] : memref<48x128xf32, #tpu.memory_space<vmem>>, vector<48x128xf32>
    %c1 = arith.constant 1 : index
    %c0_17 = arith.constant 0 : index
    %c0_18 = arith.constant 0 : index
    %23 = vector.load %arg3[%c1, %c0_17, %c0_18] : memref<3x256x128xf32, #tpu.memory_space<vmem>>, vector<1x256x128xf32>
    %24 = vector.shape_cast %23 : vector<1x256x128xf32> to vector<256x128xf32>
    %cst_19 = arith.constant dense<0.000000e+00> : vector<48x128xf32>
    %25 = tpu.matmul %21, %24, %cst_19 {dimension_numbers = #tpu.dot_dimension_numbers<[1], [0], [0], [1], [0, 0, 1, 1], [], []>} : vector<48x256xf32>, vector<256x128xf32>, vector<48x128xf32> -> vector<48x128xf32>
    %26 = arith.addf %22, %25 : vector<48x128xf32>
    %c0_20 = arith.constant 0 : index
    %c0_21 = arith.constant 0 : index
    %27 = vector.load %arg7[%c0_20, %c0_21] : memref<48x128xf32, #tpu.memory_space<vmem>>, vector<48x128xf32>
    tpu.vector_store %arg7[%c0_20, %c0_21], %26 {strides = array<i32>} : memref<48x128xf32, #tpu.memory_space<vmem>>, vector<48x128xf32>,
    %c0_i32_22 = arith.constant 0 : i32
    %28 = arith.addi %1, %c0_i32_22 : i32
    %c80_i32 = arith.constant 80 : i32
    %29 = arith.addi %28, %c80_i32 : i32
    %30 = tpu.assume_multiple %29, 8 : i32
    %c0_23 = arith.constant 0 : index
    %31 = arith.index_cast %30 : i32 to index
    %c0_24 = arith.constant 0 : index
    %32 = vector.load %arg2[%c0_23, %31, %c0_24] : memref<1x128x256xf32, #tpu.memory_space<vmem>>, vector<1x48x256xf32>
    %33 = vector.shape_cast %32 : vector<1x48x256xf32> to vector<48x256xf32>
    %c0_25 = arith.constant 0 : index
    %c0_26 = arith.constant 0 : index
    %34 = vector.load %arg7[%c0_25, %c0_26] : memref<48x128xf32, #tpu.memory_space<vmem>>, vector<48x128xf32>
    %c2 = arith.constant 2 : index
    %c0_27 = arith.constant 0 : index
    %c0_28 = arith.constant 0 : index
    %35 = vector.load %arg3[%c2, %c0_27, %c0_28] : memref<3x256x128xf32, #tpu.memory_space<vmem>>, vector<1x256x128xf32>
    %36 = vector.shape_cast %35 : vector<1x256x128xf32> to vector<256x128xf32>
    %cst_29 = arith.constant dense<0.000000e+00> : vector<48x128xf32>
    %37 = tpu.matmul %33, %36, %cst_29 {dimension_numbers = #tpu.dot_dimension_numbers<[1], [0], [0], [1], [0, 0, 1, 1], [], []>} : vector<48x256xf32>, vector<256x128xf32>, vector<48x128xf32> -> vector<48x128xf32>
    %38 = arith.addf %34, %37 : vector<48x128xf32>
    %c0_30 = arith.constant 0 : index
    %c0_31 = arith.constant 0 : index
    %39 = vector.load %arg7[%c0_30, %c0_31] : memref<48x128xf32, #tpu.memory_space<vmem>>, vector<48x128xf32>
    tpu.vector_store %arg7[%c0_30, %c0_31], %38 {strides = array<i32>} : memref<48x128xf32, #tpu.memory_space<vmem>>, vector<48x128xf32>,
    %c0_32 = arith.constant 0 : index
    %c0_33 = arith.constant 0 : index
    %40 = vector.load %arg7[%c0_32, %c0_33] : memref<48x128xf32, #tpu.memory_space<vmem>>, vector<48x128xf32>
    %c0_34 = arith.constant 0 : index
    %c0_35 = arith.constant 0 : index
    %41 = vector.load %arg4[%c0_34, %c0_35] : memref<1x128xf32, #tpu.memory_space<vmem>>, vector<1x128xf32>
    %42 = vector.broadcast %41 : vector<1x128xf32> to vector<48x128xf32>
    %43 = arith.mulf %40, %42 : vector<48x128xf32>
    %c0_36 = arith.constant 0 : index
    %c0_37 = arith.constant 0 : index
    %44 = vector.load %arg5[%c0_36, %c0_37] : memref<1x128xf32, #tpu.memory_space<vmem>>, vector<1x128xf32>
    %45 = vector.broadcast %44 : vector<1x128xf32> to vector<48x128xf32>
    %46 = arith.addf %43, %45 : vector<48x128xf32>
    %cst_38 = arith.constant 0.000000e+00 : f32
    %47 = vector.broadcast %cst_38 : f32 to vector<48x128xf32>
    %48 = arith.maximumf %46, %47 : vector<48x128xf32>
    %c0_39 = arith.constant 0 : index
    %c0_40 = arith.constant 0 : index
    %c0_41 = arith.constant 0 : index
    %49 = vector.load %arg6[%c0_39, %c0_40, %c0_41] : memref<1x48x128xf32, #tpu.memory_space<vmem>>, vector<1x48x128xf32>
    %50 = vector.shape_cast %49 : vector<1x48x128xf32> to vector<48x128xf32>
    %51 = vector.shape_cast %48 : vector<48x128xf32> to vector<1x48x128xf32>
    tpu.vector_store %arg6[%c0_39, %c0_40, %c0_41], %51 {strides = array<i32>} : memref<1x48x128xf32, #tpu.memory_space<vmem>>, vector<1x48x128xf32>,
    return
  }
  func.func @transform_0(%arg0: i32, %arg1: i32) -> (i32, i32, i32) {
    %c0_i32 = arith.constant 0 : i32
    %c0_i32_0 = arith.constant 0 : i32
    %c0_i32_1 = arith.constant 0 : i32
    return %arg0, %c0_i32, %c0_i32_0 : i32, i32, i32
  }
  func.func @transform_1(%arg0: i32, %arg1: i32) -> (i32, i32, i32) {
    %c0_i32 = arith.constant 0 : i32
    %c0_i32_0 = arith.constant 0 : i32
    %c0_i32_1 = arith.constant 0 : i32
    %c0_i32_2 = arith.constant 0 : i32
    return %c0_i32, %c0_i32_0, %c0_i32_1 : i32, i32, i32
  }
  func.func @transform_2(%arg0: i32, %arg1: i32) -> (i32, i32) {
    %c0_i32 = arith.constant 0 : i32
    %c0_i32_0 = arith.constant 0 : i32
    %c0_i32_1 = arith.constant 0 : i32
    return %c0_i32, %c0_i32_0 : i32, i32
  }
  func.func @transform_3(%arg0: i32, %arg1: i32) -> (i32, i32) {
    %c0_i32 = arith.constant 0 : i32
    %c0_i32_0 = arith.constant 0 : i32
    %c0_i32_1 = arith.constant 0 : i32
    return %c0_i32, %c0_i32_0 : i32, i32
  }
  func.func @transform_4(%arg0: i32, %arg1: i32) -> (i32, i32, i32) {
    %c0_i32 = arith.constant 0 : i32
    %c0_i32_0 = arith.constant 0 : i32
    return %arg0, %arg1, %c0_i32 : i32, i32, i32
  }
}

</mosaic_0001>

<bundles_post_ra>
// kernel: basic_conv2d_11x11.1
= control target key start
LH: loop header
LB: loop body
LE: loop exit
PB: predicated region body
PF: predicated region fallthrough
CT: control target
= control target key end

     0   :  { %s1286_s15 = smov 0   ;;  %s1288_s16 = smov 0   ;;  %s1665_s0 = inlined_call_operand.vmem [shape: f32[2,128,256], index: 0, kind: input, shape index: {}]   ;;  %s1666_s1 = inlined_call_operand.vmem [shape: f32[3,256,128], index: 1, kind: input, shape index: {}]   ;;  %s1667_s2 = inlined_call_operand.vmem [shape: f32[1,128], index: 2, kind: input, shape index: {}]   ;;  %s1668_s3 = inlined_call_operand.vmem [shape: f32[1,128], index: 3, kind: input, shape index: {}]   ;;  %s1669_s4 = inlined_call_operand.vmem [shape: f32[2,48,128], index: 4, kind: output, shape index: {}]  }
   0x1   :  { %s1290_s17 = smov 0  }
   0x2 LB: > { %s26_s18 = sadd.s32 1, %s1255_s16  ;;  %p853_p0 = scmp.ge.s32.totalorder %s1259_s17, 1  ;;  %s1259_s17 = sphi %s1290_s17, %s14_s17   ;;  %s1255_s16 = sphi %s1288_s16, %s1671_s16   ;;  %s1251_s15 = sphi %s1286_s15, %s1670_s15  }
   0x3   : > { %p28_p1 = scmp.ge.s32.totalorder %s26_s18, 2  ;;  %p176_p2 = scmp.lt.s32.totalorder %s1259_s17, 3 }
   0x5   : > { %s1673_s18 = smov (%p28_p1, %s26_s18), 0  ;;  %p177_p3 = pnand %p853_p0, %p176_p2 }
   0x6   : > { %v267_v0 = vld [vmem:[%s1666_s1 + $0x80] sm:$0xff] (!%p177_p3)  ;;  %v268_v1 = vld [vmem:[%s1666_s1 + $0x88] sm:$0xff] (!%p177_p3)  ;;  %v269_v11 = vld [vmem:[%s1666_s1 + $0x90] sm:$0xff] (!%p177_p3)  ;;  %p206_p4 = scmp.lt.s32.totalorder (!%p177_p3), %s1251_s15, 1 }
   0x7   : > { %180 = sbr.rel (%p177_p3) target bundleno = 307 (0x133), region = 36  ;;  %v885_v2 = vld [vmem:[%s1666_s1 + $0x180] sm:$0xff] (!%p177_p3)  ;;  %v1100_v3 = vpack.c.bf16 (!%p177_p3), %v268_v1, %v267_v0  ;;  %v886_v4 = vld [vmem:[%s1666_s1 + $0x188] sm:$0xff] (!%p177_p3)  ;;  %v270_v13 = vld [vmem:[%s1666_s1 + $0x98] sm:$0xff] (!%p177_p3) }
   0x8   : > { %v251_v5 = vld [vmem:[%s1666_s1] sm:$0xff] (!%p177_p3)  ;;  %v252_v6 = vld [vmem:[%s1666_s1 + $0x8] sm:$0xff] (!%p177_p3)  ;;  %v1132_v7 = vpack.c.bf16 (!%p177_p3), %v886_v4, %v885_v2  ;;  %v887_v14 = vld [vmem:[%s1666_s1 + $0x190] sm:$0xff] (!%p177_p3)  ;;  %v1104_v16 = vpack.c.bf16 (!%p177_p3), %v270_v13, %v269_v11 }
   0x9   : > { %v1102_v8 = vpack.c.bf16 (!%p177_p3), %v252_v6, %v251_v5  ;;  %v869_v9 = vld [vmem:[%s1666_s1 + $0x100] sm:$0xff] (!%p177_p3)  ;;  %v870_v10 = vld [vmem:[%s1666_s1 + $0x108] sm:$0xff] (!%p177_p3)  ;;  %1101 = vmatprep.subr.bf16.mxu0 (!%p177_p3), %v1100_v3  ;;  %v888_v15 = vld [vmem:[%s1666_s1 + $0x198] sm:$0xff] (!%p177_p3) }
   0xa   : > { %v1134_v12 = vpack.c.bf16 (!%p177_p3), %v870_v10, %v869_v9  ;;  %1133 = vmatprep.subr.bf16.mxu1 (!%p177_p3), %v1132_v7  ;;  %v1136_v17 = vpack.c.bf16 (!%p177_p3), %v888_v15, %v887_v14  ;;  %v253_v18 = vld [vmem:[%s1666_s1 + $0x10] sm:$0xff] (!%p177_p3)  ;;  %v254_v19 = vld [vmem:[%s1666_s1 + $0x18] sm:$0xff] (!%p177_p3)  ;;  %v271_v23 = vld [vmem:[%s1666_s1 + $0xa0] sm:$0xff] (!%p177_p3) }
   0xb   : > { %1103 = vmatpush3.bf16.msra.mxu0 (!%p177_p3), %v1102_v8  ;;  %v871_v20 = vld [vmem:[%s1666_s1 + $0x110] sm:$0xff] (!%p177_p3)  ;;  %v1106_v21 = vpack.c.bf16 (!%p177_p3), %v254_v19, %v253_v18  ;;  %v872_v22 = vld [vmem:[%s1666_s1 + $0x118] sm:$0xff] (!%p177_p3)  ;;  %v272_v24 = vld [vmem:[%s1666_s1 + $0xa8] sm:$0xff] (!%p177_p3) }
   0xc   : > { %1135 = vmatpush3.bf16.msra.mxu1 (!%p177_p3), %v1134_v12  ;;  %1105 = vmatprep.subr.bf16.mxu0 (!%p177_p3), %v1104_v16  ;;  %v1138_v25 = vpack.c.bf16 (!%p177_p3), %v872_v22, %v871_v20  ;;  %v1108_v26 = vpack.c.bf16 (!%p177_p3), %v272_v24, %v271_v23  ;;  %v889_v27 = vld [vmem:[%s1666_s1 + $0x1a0] sm:$0xff] (!%p177_p3)  ;;  %v890_v28 = vld [vmem:[%s1666_s1 + $0x1a8] sm:$0xff] (!%p177_p3)  ;;  %v273_v35 = vld [vmem:[%s1666_s1 + $0xb0] sm:$0xff] (!%p177_p3) }
   0xd   : > { %1137 = vmatprep.subr.bf16.mxu1 (!%p177_p3), %v1136_v17  ;;  %v255_v29 = vld [vmem:[%s1666_s1 + $0x20] sm:$0xff] (!%p177_p3)  ;;  %v1140_v30 = vpack.c.bf16 (!%p177_p3), %v890_v28, %v889_v27  ;;  %v256_v31 = vld [vmem:[%s1666_s1 + $0x28] sm:$0xff] (!%p177_p3)  ;;  %v274_v36 = vld [vmem:[%s1666_s1 + $0xb8] sm:$0xff] (!%p177_p3) }
   0xe   : > { %v873_v32 = vld [vmem:[%s1666_s1 + $0x120] sm:$0xff]  ;;  %v874_v33 = vld [vmem:[%s1666_s1 + $0x128] sm:$0xff]  ;;  %v1110_v34 = vpack.c.bf16 %v256_v31, %v255_v29  ;;  %v891_v37 = vld [vmem:[%s1666_s1 + $0x1b0] sm:$0xff]  ;;  %v1112_v39 = vpack.c.bf16 %v274_v36, %v273_v35  ;;  %s1675_s15 = smov (!%p206_p4, %s1251_s15), 1 }
   0xf   : > { %1107 = vmatpush3.bf16.msra.mxu0 %v1106_v21  ;;  %v1142_v38 = vpack.c.bf16 %v874_v33, %v873_v32  ;;  %v892_v40 = vld [vmem:[%s1666_s1 + $0x1b8] sm:$0xff]  ;;  %v257_v41 = vld [vmem:[%s1666_s1 + $0x30] sm:$0xff]  ;;  %v275_v46 = vld [vmem:[%s1666_s1 + $0xc0] sm:$0xff]  ;;  %s949_s19 = sshll.u32 %s1675_s15, 8  ;;  %s1212_s22 = smul.u32 48, %s1675_s15 }
  0x10   : > { %1139 = vmatpush3.bf16.msra.mxu1 %v1138_v25  ;;  %1109 = vmatprep.subr.bf16.mxu0 %v1108_v26  ;;  %v258_v42 = vld [vmem:[%s1666_s1 + $0x38] sm:$0xff]  ;;  %v1144_v43 = vpack.c.bf16 %v892_v40, %v891_v37  ;;  %v875_v44 = vld [vmem:[%s1666_s1 + $0x130] sm:$0xff]  ;;  %v276_v47 = vld [vmem:[%s1666_s1 + $0xc8] sm:$0xff]  ;;  %s1466_s8 = scalar_lea.vmem %s1665_s0, %s949_s19 }
  0x11   : > { %1141 = vmatprep.subr.bf16.mxu1 %v1140_v30  ;;  %v876_v45 = vld [vmem:[%s1666_s1 + $0x138] sm:$0xff]  ;;  %v893_v48 = vld [vmem:[%s1666_s1 + $0x1c0] sm:$0xff]  ;;  %v894_v49 = vld [vmem:[%s1666_s1 + $0x1c8] sm:$0xff]  ;;  %v1114_v50 = vpack.c.bf16 %v258_v42, %v257_v41  ;;  %v1116_v52 = vpack.c.bf16 %v276_v47, %v275_v46  ;;  %s219_s27 = scalar_lea.vmem %s1669_s4, %s1212_s22 }
  0x12   : > { %v1146_v51 = vpack.c.bf16 %v876_v45, %v875_v44  ;;  %v259_v53 = vld [vmem:[%s1666_s1 + $0x40] sm:$0xff]  ;;  %v260_v54 = vld [vmem:[%s1666_s1 + $0x48] sm:$0xff]  ;;  %v1148_v56 = vpack.c.bf16 %v894_v49, %v893_v48  ;;  %v277_v58 = vld [vmem:[%s1666_s1 + $0xd0] sm:$0xff] }
  0x13   : > { %1111 = vmatpush3.bf16.msra.mxu0 %v1110_v34  ;;  %v877_v55 = vld [vmem:[%s1666_s1 + $0x140] sm:$0xff]  ;;  %v878_v57 = vld [vmem:[%s1666_s1 + $0x148] sm:$0xff]  ;;  %v278_v59 = vld [vmem:[%s1666_s1 + $0xd8] sm:$0xff]  ;;  %v1118_v62 = vpack.c.bf16 %v260_v54, %v259_v53 }
  0x14   : > { %1143 = vmatpush3.bf16.msra.mxu1 %v1142_v38  ;;  %1113 = vmatprep.subr.bf16.mxu0 %v1112_v39  ;;  %v895_v60 = vld [vmem:[%s1666_s1 + $0x1d0] sm:$0xff]  ;;  %v896_v61 = vld [vmem:[%s1666_s1 + $0x1d8] sm:$0xff]  ;;  %v1150_v63 = vpack.c.bf16 %v878_v57, %v877_v55  ;;  %v1120_v0 = vpack.c.bf16 %v278_v59, %v277_v58  ;;  %v279_v6 = vld [vmem:[%s1666_s1 + $0xe0] sm:$0xff] }
  0x15   : > { %1145 = vmatprep.subr.bf16.mxu1 %v1144_v43  ;;  %v261_v1 = vld [vmem:[%s1666_s1 + $0x50] sm:$0xff]  ;;  %v262_v2 = vld [vmem:[%s1666_s1 + $0x58] sm:$0xff]  ;;  %v1152_v4 = vpack.c.bf16 %v896_v61, %v895_v60  ;;  %v280_v7 = vld [vmem:[%s1666_s1 + $0xe8] sm:$0xff] }
  0x16   : > { %v879_v3 = vld [vmem:[%s1666_s1 + $0x150] sm:$0xff]  ;;  %v880_v5 = vld [vmem:[%s1666_s1 + $0x158] sm:$0xff]  ;;  %v897_v8 = vld [vmem:[%s1666_s1 + $0x1e0] sm:$0xff]  ;;  %v1122_v10 = vpack.c.bf16 %v262_v2, %v261_v1  ;;  %v1124_v14 = vpack.c.bf16 %v280_v7, %v279_v6 }
  0x17   : > { %1115 = vmatpush3.bf16.msra.mxu0 %v1114_v50  ;;  %v898_v9 = vld [vmem:[%s1666_s1 + $0x1e8] sm:$0xff]  ;;  %v263_v11 = vld [vmem:[%s1666_s1 + $0x60] sm:$0xff]  ;;  %v1154_v13 = vpack.c.bf16 %v880_v5, %v879_v3  ;;  %v1485_v17 = vld [vmem:[%s1466_s8 + $0x58] sm:$0xff] }
  0x18   : > { %1147 = vmatpush3.bf16.msra.mxu1 %v1146_v51  ;;  %1117 = vmatprep.subr.bf16.mxu0 %v1116_v52  ;;  %v264_v12 = vld [vmem:[%s1666_s1 + $0x68] sm:$0xff]  ;;  %v881_v15 = vld [vmem:[%s1666_s1 + $0x160] sm:$0xff]  ;;  %v1156_v18 = vpack.c.bf16 %v898_v9, %v897_v8  ;;  %v281_v20 = vld [vmem:[%s1666_s1 + $0xf0] sm:$0xff] }
  0x19   : > { %1149 = vmatprep.subr.bf16.mxu1 %v1148_v56  ;;  %v234_v16 = vld [vmem:[%s1466_s8 + $0x8] sm:$0xff]  ;;  %v282_v21 = vld [vmem:[%s1666_s1 + $0xf8] sm:$0xff]  ;;  %v899_v22 = vld [vmem:[%s1666_s1 + $0x1f0] sm:$0xff]  ;;  %511 = vmatprep.mubr.f32.mxu1 %v1485_v17  ;;  %v1126_v24 = vpack.c.bf16 %v264_v12, %v263_v11 }
  0x1a   : > { %v882_v19 = vld [vmem:[%s1666_s1 + $0x168] sm:$0xff]  ;;  %347 = vmatprep.mubr.f32.mxu0 %v234_v16  ;;  %v900_v23 = vld [vmem:[%s1666_s1 + $0x1f8] sm:$0xff]  ;;  %v1128_v26 = vpack.c.bf16 %v282_v21, %v281_v20  ;;  %v265_v27 = vld [vmem:[%s1666_s1 + $0x70] sm:$0xff] }
  0x1b   : > { %1119 = vmatpush3.bf16.msra.mxu0 %v1118_v62  ;;  %v1158_v25 = vpack.c.bf16 %v882_v19, %v881_v15  ;;  %v266_v28 = vld [vmem:[%s1666_s1 + $0x78] sm:$0xff]  ;;  %v883_v29 = vld [vmem:[%s1666_s1 + $0x170] sm:$0xff]  ;;  %v1160_v30 = vpack.c.bf16 %v900_v23, %v899_v22  ;;  %v929_v32 = vld [vmem:[%s1666_s1 + $0x280] sm:$0xff] }
  0x1c   : > { %1151 = vmatpush3.bf16.msra.mxu1 %v1150_v63  ;;  %1121 = vmatprep.subr.bf16.mxu0 %v1120_v0  ;;  %v884_v31 = vld [vmem:[%s1666_s1 + $0x178] sm:$0xff]  ;;  %v930_v33 = vld [vmem:[%s1666_s1 + $0x288] sm:$0xff]  ;;  %v1130_v34 = vpack.c.bf16 %v266_v28, %v265_v27  ;;  %v913_v37 = vld [vmem:[%s1666_s1 + $0x200] sm:$0xff] }
  0x1d   : > { %1153 = vmatprep.subr.bf16.mxu1 %v1152_v4  ;;  %v1162_v35 = vpack.c.bf16 %v884_v31, %v883_v29  ;;  %v1164_v36 = vpack.c.bf16 %v930_v33, %v929_v32  ;;  %v914_v38 = vld [vmem:[%s1666_s1 + $0x208] sm:$0xff]  ;;  %v931_v39 = vld [vmem:[%s1666_s1 + $0x290] sm:$0xff]  ;;  %v932_v40 = vld [vmem:[%s1666_s1 + $0x298] sm:$0xff] }
  0x1e   : > { %v233_v41 = vld [vmem:[%s1466_s8] sm:$0xff]  ;;  %v1166_v42 = vpack.c.bf16 %v914_v38, %v913_v37  ;;  %v1535_v43 = vld [vmem:[%s1466_s8 + $0x50] sm:$0xff]  ;;  %v1168_v44 = vpack.c.bf16 %v932_v40, %v931_v39  ;;  %v916_v46 = vld [vmem:[%s1666_s1 + $0x218] sm:$0xff] }
  0x1f   : > { %1123 = vmatpush3.bf16.msra.mxu0 %v1122_v10  ;;  %v915_v45 = vld [vmem:[%s1666_s1 + $0x210] sm:$0xff]  ;;  %v933_v47 = vld [vmem:[%s1666_s1 + $0x2a0] sm:$0xff]  ;;  %v934_v48 = vld [vmem:[%s1666_s1 + $0x2a8] sm:$0xff] }
  0x20   : > { %1155 = vmatpush3.bf16.msra.mxu1 %v1154_v13  ;;  %1125 = vmatprep.subr.bf16.mxu0 %v1124_v14  ;;  %v236_v49 = vld [vmem:[%s1466_s8 + $0x18] sm:$0xff]  ;;  %v1170_v50 = vpack.c.bf16 %v916_v46, %v915_v45  ;;  %v860_v51 = vld [vmem:[%s1466_s8 + $0x68] sm:$0xff]  ;;  %v235_v52 = vld [vmem:[%s1466_s8 + $0x10] sm:$0xff]  ;;  %v1172_v53 = vpack.c.bf16 %v934_v48, %v933_v47 }
  0x21   : > { %1157 = vmatprep.subr.bf16.mxu1 %v1156_v18  ;;  %v917_v54 = vld [vmem:[%s1666_s1 + $0x220] sm:$0xff]  ;;  %v918_v55 = vld [vmem:[%s1666_s1 + $0x228] sm:$0xff]  ;;  %v935_v57 = vld [vmem:[%s1666_s1 + $0x2b0] sm:$0xff] }
  0x22   : > { %v859_v56 = vld [vmem:[%s1466_s8 + $0x60] sm:$0xff]  ;;  %v936_v58 = vld [vmem:[%s1666_s1 + $0x2b8] sm:$0xff]  ;;  %v238_v59 = vld [vmem:[%s1466_s8 + $0x28] sm:$0xff]  ;;  %v1174_v60 = vpack.c.bf16 %v918_v55, %v917_v54 }
  0x23   : > { %1127 = vmatpush3.bf16.msra.mxu0 %v1126_v24  ;;  %v862_v61 = vld [vmem:[%s1466_s8 + $0x78] sm:$0xff]  ;;  %v237_v62 = vld [vmem:[%s1466_s8 + $0x20] sm:$0xff]  ;;  %v1176_v63 = vpack.c.bf16 %v936_v58, %v935_v57  ;;  %v919_v0 = vld [vmem:[%s1666_s1 + $0x230] sm:$0xff] }
  0x24   : > { %1159 = vmatpush3.bf16.msra.mxu1 %v1158_v25  ;;  %1129 = vmatprep.subr.bf16.mxu0 %v1128_v26  ;;  %v920_v1 = vld [vmem:[%s1666_s1 + $0x238] sm:$0xff]  ;;  %v861_v2 = vld [vmem:[%s1466_s8 + $0x70] sm:$0xff]  ;;  %v937_v3 = vld [vmem:[%s1666_s1 + $0x2c0] sm:$0xff] }
  0x25   : > { %1161 = vmatprep.subr.bf16.mxu1 %v1160_v30  ;;  %v938_v4 = vld [vmem:[%s1666_s1 + $0x2c8] sm:$0xff]  ;;  %v240_v5 = vld [vmem:[%s1466_s8 + $0x38] sm:$0xff]  ;;  %v1178_v6 = vpack.c.bf16 %v920_v1, %v919_v0  ;;  %v239_v8 = vld [vmem:[%s1466_s8 + $0x30] sm:$0xff] }
  0x26   : > { %v864_v7 = vld [vmem:[%s1466_s8 + $0x88] sm:$0xff]  ;;  %v1180_v9 = vpack.c.bf16 %v938_v4, %v937_v3  ;;  %v921_v10 = vld [vmem:[%s1666_s1 + $0x240] sm:$0xff]  ;;  %v939_v13 = vld [vmem:[%s1666_s1 + $0x2d0] sm:$0xff] }
  0x27   : > { %1131 = vmatpush3.bf16.msra.mxu0 %v1130_v34  ;;  %v922_v11 = vld [vmem:[%s1666_s1 + $0x248] sm:$0xff]  ;;  %v863_v12 = vld [vmem:[%s1466_s8 + $0x80] sm:$0xff]  ;;  %v940_v14 = vld [vmem:[%s1666_s1 + $0x2d8] sm:$0xff] }
  0x28   : > { %1163 = vmatpush3.bf16.msra.mxu1 %v1162_v35  ;;  %1165 = vmatprep.subr.bf16.mxu0 %v1164_v36  ;;  %v242_v15 = vld [vmem:[%s1466_s8 + $0x48] sm:$0xff]  ;;  %v1182_v16 = vpack.c.bf16 %v922_v11, %v921_v10  ;;  %v866_v18 = vld [vmem:[%s1466_s8 + $0x98] sm:$0xff]  ;;  %v241_v19 = vld [vmem:[%s1466_s8 + $0x40] sm:$0xff]  ;;  %v1184_v20 = vpack.c.bf16 %v940_v14, %v939_v13 }
  0x29   : > { %1196 = vmatprep.subr.bf16.mxu1 %v1164_v36  ;;  %v923_v21 = vld [vmem:[%s1666_s1 + $0x250] sm:$0xff]  ;;  %v924_v22 = vld [vmem:[%s1666_s1 + $0x258] sm:$0xff]  ;;  %v941_v24 = vld [vmem:[%s1666_s1 + $0x2e0] sm:$0xff] }
  0x2a   : > { %348 = vmatmul.mubr.f32.vlgmr.msra.gmra.mrb[0].mxu0 %v233_v41  ;;  %v865_v23 = vld [vmem:[%s1466_s8 + $0x90] sm:$0xff]  ;;  %v942_v25 = vld [vmem:[%s1666_s1 + $0x2e8] sm:$0xff]  ;;  %v1186_v26 = vpack.c.bf16 %v924_v22, %v923_v21  ;;  %v925_v29 = vld [vmem:[%s1666_s1 + $0x260] sm:$0xff] }
  0x2b   : > { %512 = vmatmul.mubr.f32.vlgmr.msra.gmra.mrb[0].mxu1 %v1535_v43  ;;  %1167 = vmatpush3.bf16.msra.mxu0 %v1166_v42  ;;  %v868_v27 = vld [vmem:[%s1466_s8 + $0xa8] sm:$0xff]  ;;  %v1188_v28 = vpack.c.bf16 %v942_v25, %v941_v24  ;;  %v867_v31 = vld [vmem:[%s1466_s8 + $0xa0] sm:$0xff]  ;;  %v943_v32 = vld [vmem:[%s1666_s1 + $0x2f0] sm:$0xff] }
  0x2c   : > { %1204 = vmatpush3.bf16.msra.mxu1 %v1166_v42  ;;  %1169 = vmatprep.subr.bf16.mxu0 %v1168_v44  ;;  %v926_v30 = vld [vmem:[%s1666_s1 + $0x268] sm:$0xff]  ;;  %v944_v33 = vld [vmem:[%s1666_s1 + $0x2f8] sm:$0xff]  ;;  %v927_v36 = vld [vmem:[%s1666_s1 + $0x270] sm:$0xff] }
  0x2d   : > { %1197 = vmatprep.subr.bf16.mxu1 %v1168_v44  ;;  %352 = vmatprep.mubr.f32.mxu0 %v236_v49  ;;  %v1190_v34 = vpack.c.bf16 %v926_v30, %v925_v29  ;;  %v908_v35 = vld [vmem:[%s1466_s8 + $0xd8] sm:$0xff]  ;;  %v907_v39 = vld [vmem:[%s1466_s8 + $0xd0] sm:$0xff]  ;;  %v910_v41 = vld [vmem:[%s1466_s8 + $0xe8] sm:$0xff] }
  0x2e   : > { %516 = vmatprep.mubr.f32.mxu1 %v860_v51  ;;  %353 = vmatmul.mubr.f32.gmra.mrb[2].mxu0 %v235_v52  ;;  %v928_v37 = vld [vmem:[%s1666_s1 + $0x278] sm:$0xff]  ;;  %v903_v42 = vld [vmem:[%s1466_s8 + $0xb0] sm:$0xff]  ;;  %v906_v44 = vld [vmem:[%s1466_s8 + $0xc8] sm:$0xff] }
  0x2f   : > { %1171 = vmatpush3.bf16.msra.mxu0 %v1170_v50  ;;  %517 = vmatmul.mubr.f32.gmra.mrb[2].mxu1 %v859_v56  ;;  %v1194_v38 = vpack.c.bf16 %v928_v37, %v927_v36  ;;  %v904_v40 = vld [vmem:[%s1466_s8 + $0xb8] sm:$0xff]  ;;  %v905_v46 = vld [vmem:[%s1466_s8 + $0xc0] sm:$0xff]  ;;  %v911_v47 = vld [vmem:[%s1466_s8 + $0xf0] sm:$0xff] }
  0x30   : > { %1205 = vmatpush3.bf16.msra.mxu1 %v1170_v50  ;;  %1173 = vmatprep.subr.bf16.mxu0 %v1172_v53  ;;  %v912_v45 = vld [vmem:[%s1466_s8 + $0xf8] sm:$0xff] }
  0x31   : > { %1198 = vmatprep.subr.bf16.mxu1 %v1172_v53  ;;  %357 = vmatprep.mubr.f32.mxu0 %v238_v59 }
  0x32   : > { %521 = vmatprep.mubr.f32.mxu1 %v862_v61  ;;  %358 = vmatmul.mubr.f32.gmra.mrb[4].mxu0 %v237_v62 }
  0x33   : > { %1175 = vmatpush3.bf16.msra.mxu0 %v1174_v60  ;;  %522 = vmatmul.mubr.f32.gmra.mrb[4].mxu1 %v861_v2 }
  0x34   : > { %1206 = vmatpush3.bf16.msra.mxu1 %v1174_v60  ;;  %1177 = vmatprep.subr.bf16.mxu0 %v1176_v63 }
  0x35   : > { %1199 = vmatprep.subr.bf16.mxu1 %v1176_v63  ;;  %362 = vmatprep.mubr.f32.mxu0 %v240_v5 }
  0x36   : > { %526 = vmatprep.mubr.f32.mxu1 %v864_v7  ;;  %363 = vmatmul.mubr.f32.gmra.mrb[6].mxu0 %v239_v8 }
  0x37   : > { %1179 = vmatpush3.bf16.msra.mxu0 %v1178_v6  ;;  %527 = vmatmul.mubr.f32.gmra.mrb[6].mxu1 %v863_v12 }
  0x38   : > { %1207 = vmatpush3.bf16.msra.mxu1 %v1178_v6  ;;  %1181 = vmatprep.subr.bf16.mxu0 %v1180_v9 }
  0x39   : > { %1200 = vmatprep.subr.bf16.mxu1 %v1180_v9  ;;  %367 = vmatprep.mubr.f32.mxu0 %v242_v15 }
  0x3a   : > { %531 = vmatprep.mubr.f32.mxu1 %v866_v18  ;;  %368 = vmatmul.mubr.f32.gmra.mrb[8].mxu0 %v241_v19 }
  0x3b   : > { %1183 = vmatpush3.bf16.msra.mxu0 %v1182_v16  ;;  %532 = vmatmul.mubr.f32.gmra.mrb[8].mxu1 %v865_v23 }
  0x3c   : > { %1208 = vmatpush3.bf16.msra.mxu1 %v1182_v16  ;;  %1185 = vmatprep.subr.bf16.mxu0 %v1184_v20 }
  0x3d   : > { %1201 = vmatprep.subr.bf16.mxu1 %v1184_v20  ;;  %372 = vmatprep.mubr.f32.mxu0 %v1485_v17  ;;  %v1192_v17 = vpack.c.bf16 %v944_v33, %v943_v32  ;;  %v945_v32 = vld [vmem:[%s1667_s2] ss:$0 sm:$0xff] }
  0x3e   : > { %536 = vmatprep.mubr.f32.mxu1 %v868_v27  ;;  %373 = vmatmul.mubr.f32.gmra.mrb[10].mxu0 %v1535_v43  ;;  %v909_v43 = vld [vmem:[%s1466_s8 + $0xe0] sm:$0xff] }
  0x3f   : > { %1187 = vmatpush3.bf16.msra.mxu0 %v1186_v26  ;;  %537 = vmatmul.mubr.f32.gmra.mrb[10].mxu1 %v867_v31 }
  0x40   : > { %1209 = vmatpush3.bf16.msra.mxu1 %v1186_v26  ;;  %1189 = vmatprep.subr.bf16.mxu0 %v1188_v28 }
  0x41   : > { %1202 = vmatprep.subr.bf16.mxu1 %v1188_v28  ;;  %675 = vmatprep.mubr.f32.mxu0 %v868_v27 }
  0x42   : > { %690 = vmatprep.mubr.f32.mxu1 %v908_v35 }
  0x43   : > { %1191 = vmatpush3.bf16.msra.mxu0 %v1190_v34 }
  0x44   : > { %1210 = vmatpush3.bf16.msra.mxu1 %v1190_v34  ;;  %1193 = vmatprep.subr.bf16.mxu0 %v1192_v17 }
  0x45   : > { %1203 = vmatprep.subr.bf16.mxu1 %v1192_v17  ;;  %v946_v17 = vld [vmem:[%s1668_s3] ss:$0 sm:$0xff] }
  0x47   : > { %1195 = vmatpush3.bf16.msra.mxu0 %v1194_v38 }
  0x48   : > { %1211 = vmatpush3.bf16.msra.mxu1 %v1194_v38 }
  0x4a   : > { %676 = vmatmul.mubr.f32.vlgmr.msra.gmra.mrb[12].mxu0 %v867_v31 }
  0x4b   : > { %691 = vmatmul.mubr.f32.vlgmr.msra.gmra.mrb[12].mxu1 %v907_v39  ;;  %680 = vmatprep.mubr.f32.mxu0 %v904_v40 }
  0x4c   : > { %695 = vmatprep.mubr.f32.mxu1 %v910_v41 }
  0x4e   : > { %681 = vmatmul.mubr.f32.gmra.mrb[14].mxu0 %v903_v42 }
  0x4f   : > { %696 = vmatmul.mubr.f32.gmra.mrb[14].mxu1 %v909_v43  ;;  %685 = vmatprep.mubr.f32.mxu0 %v906_v44 }
  0x50   : > { %700 = vmatprep.mubr.f32.mxu1 %v912_v45 }
  0x52   : > { %686 = vmatmul.mubr.f32.gmra.mrb[16].mxu0 %v905_v46 }
  0x53   : > { %701 = vmatmul.mubr.f32.gmra.mrb[16].mxu1 %v911_v47 }
  0xfd   : > { %v982_v48 = vpop.f32.mrb[0].mxu0 }
  0xfe   : > { %v1032_v49 = vpop.f32.mrb[0].mxu1  ;;  %v983_v50 = vpop.f32.mrb[1].mxu0 }
  0xff   : > { %v984_v51 = vadd.f32 %v983_v50, %v982_v48  ;;  %v1033_v52 = vpop.f32.mrb[1].mxu1 }
 0x100   : > { %v1034_v53 = vadd.f32 %v1033_v52, %v1032_v49 }
 0x101   : > { %v985_v54 = vpop.f32.mrb[2].mxu0 }
 0x102   : > { %v542_v55 = vadd.f32 %v1034_v53, %v984_v51  ;;  %v1035_v56 = vpop.f32.mrb[2].mxu1  ;;  %v986_v57 = vpop.f32.mrb[3].mxu0 }
 0x103   : > { %v987_v58 = vadd.f32 %v986_v57, %v985_v54  ;;  %v1036_v59 = vpop.f32.mrb[3].mxu1 }
 0x104   : > { %v1037_v60 = vadd.f32 %v1036_v59, %v1035_v56 }
 0x105   : > { %v988_v61 = vpop.f32.mrb[4].mxu0 }
 0x106   : > { %v543_v62 = vadd.f32 %v1037_v60, %v987_v58  ;;  %v1038_v63 = vpop.f32.mrb[4].mxu1  ;;  %v989_v0 = vpop.f32.mrb[5].mxu0 }
 0x107   : > { %v990_v1 = vadd.f32 %v989_v0, %v988_v61  ;;  %v1039_v2 = vpop.f32.mrb[5].mxu1 }
 0x108   : > { %v1040_v3 = vadd.f32 %v1039_v2, %v1038_v63 }
 0x109   : > { %v991_v4 = vpop.f32.mrb[6].mxu0 }
 0x10a   : > { %v544_v5 = vadd.f32 %v1040_v3, %v990_v1  ;;  %v1041_v6 = vpop.f32.mrb[6].mxu1  ;;  %v992_v7 = vpop.f32.mrb[7].mxu0 }
 0x10b   : > { %v993_v8 = vadd.f32 %v992_v7, %v991_v4  ;;  %v1042_v9 = vpop.f32.mrb[7].mxu1 }
 0x10c   : > { %v1043_v10 = vadd.f32 %v1042_v9, %v1041_v6 }
 0x10d   : > { %v994_v11 = vpop.f32.mrb[8].mxu0 }
 0x10e   : > { %v545_v12 = vadd.f32 %v1043_v10, %v993_v8  ;;  %v1044_v13 = vpop.f32.mrb[8].mxu1  ;;  %v995_v14 = vpop.f32.mrb[9].mxu0 }
 0x10f   : > { %v996_v15 = vadd.f32 %v995_v14, %v994_v11  ;;  %v1045_v16 = vpop.f32.mrb[9].mxu1 }
 0x110   : > { %v1046_v18 = vadd.f32 %v1045_v16, %v1044_v13 }
 0x111   : > { %v997_v19 = vpop.f32.mrb[10].mxu0 }
 0x112   : > { %v546_v20 = vadd.f32 %v1046_v18, %v996_v15  ;;  %v1047_v21 = vpop.f32.mrb[10].mxu1  ;;  %v998_v22 = vpop.f32.mrb[11].mxu0 }
 0x113   : > { %v999_v23 = vadd.f32 %v998_v22, %v997_v19  ;;  %v1048_v24 = vpop.f32.mrb[11].mxu1 }
 0x114   : > { %v1049_v25 = vadd.f32 %v1048_v24, %v1047_v21 }
 0x116   : > { %v547_v26 = vadd.f32 %v1049_v25, %v999_v23 }
 0x11d   : > { %v1082_v27 = vpop.f32.mrb[12].mxu0 }
 0x11e   : > { %v1091_v28 = vpop.f32.mrb[12].mxu1  ;;  %v1083_v29 = vpop.f32.mrb[13].mxu0 }
 0x11f   : > { %v1084_v30 = vadd.f32 %v1083_v29, %v1082_v27  ;;  %v1092_v31 = vpop.f32.mrb[13].mxu1 }
 0x120   : > { %v1093_v33 = vadd.f32 %v1092_v31, %v1091_v28 }
 0x121   : > { %v706_v34 = vadd.f32 %v1084_v30, %v542_v55  ;;  %v1085_v35 = vpop.f32.mrb[14].mxu0 }
 0x122   : > { %v709_v36 = vadd.f32 %v1093_v33, %v545_v12  ;;  %v1094_v37 = vpop.f32.mrb[14].mxu1  ;;  %v1086_v38 = vpop.f32.mrb[15].mxu0 }
 0x123   : > { %v731_v39 = vmul.f32 %v945_v32, %v706_v34  ;;  %v1087_v40 = vadd.f32 %v1086_v38, %v1085_v35  ;;  %v1095_v41 = vpop.f32.mrb[15].mxu1 }
 0x124   : > { %v734_v42 = vmul.f32 %v945_v32, %v709_v36  ;;  %v1096_v43 = vadd.f32 %v1095_v41, %v1094_v37 }
 0x125   : > { %v744_v44 = vadd.f32 %v946_v17, %v731_v39  ;;  %v707_v45 = vadd.f32 %v1087_v40, %v543_v62  ;;  %v1088_v46 = vpop.f32.mrb[16].mxu0 }
 0x126   : > { %v747_v47 = vadd.f32 %v946_v17, %v734_v42  ;;  %v710_v48 = vadd.f32 %v1096_v43, %v546_v20  ;;  %v1097_v49 = vpop.f32.mrb[16].mxu1  ;;  %v1089_v50 = vpop.f32.mrb[17].mxu0 }
 0x127   : > { %v750_v51 = vmax.f32 %v744_v44, 0.0  ;;  %v732_v52 = vmul.f32 %v945_v32, %v707_v45  ;;  %v1090_v53 = vadd.f32 %v1089_v50, %v1088_v46  ;;  %v1098_v54 = vpop.f32.mrb[17].mxu1 }
 0x128   : > { %v753_v55 = vmax.f32 %v747_v47, 0.0  ;;  %v735_v56 = vmul.f32 %v945_v32, %v710_v48  ;;  %v1099_v57 = vadd.f32 %v1098_v54, %v1097_v49 }
 0x129   : > { %756 = vst [vmem:[%s219_s27] sm:$0xff] %v750_v51  ;;  %v745_v58 = vadd.f32 %v946_v17, %v732_v52  ;;  %v708_v59 = vadd.f32 %v1090_v53, %v544_v5 }
 0x12a   : > { %759 = vst [vmem:[%s219_s27 + $0x18] sm:$0xff] %v753_v55  ;;  %v748_v60 = vadd.f32 %v946_v17, %v735_v56  ;;  %v711_v61 = vadd.f32 %v1099_v57, %v547_v26 }
 0x12b   : > { %v751_v62 = vmax.f32 %v745_v58, 0.0  ;;  %v733_v63 = vmul.f32 %v945_v32, %v708_v59 }
 0x12c   : > { %v754_v0 = vmax.f32 %v748_v60, 0.0  ;;  %v736_v1 = vmul.f32 %v945_v32, %v711_v61 }
 0x12d   : > { %757 = vst [vmem:[%s219_s27 + $0x8] sm:$0xff] %v751_v62  ;;  %v746_v2 = vadd.f32 %v946_v17, %v733_v63 }
 0x12e   : > { %760 = vst [vmem:[%s219_s27 + $0x20] sm:$0xff] %v754_v0  ;;  %v749_v3 = vadd.f32 %v946_v17, %v736_v1 }
 0x12f   : > { %v752_v4 = vmax.f32 %v746_v2, 0.0 }
 0x130   : > { %v755_v6 = vmax.f32 %v749_v3, 0.0 }
 0x131   : > { %758 = vst [vmem:[%s219_s27 + $0x10] sm:$0xff] %v752_v4 }
 0x132   : > { %761 = vst [vmem:[%s219_s27 + $0x28] sm:$0xff] %v755_v6 }
 0x133 PF: > { %s14_s17 = sadd.s32 1, %s1259_s17   ;;  %s1670_s15 = smov %s1255_s16 }
 0x134   : > { %p11_p5 = scmp.ge.s32.totalorder %s14_s17, 4   ;;  %s1671_s16 = smov %s1673_s18 }
 0x136   :  { %13 = sbr.rel (!%p11_p5) target bundleno = 2 (0x2), region = 71 }

</bundles_post_ra>
